<compile_context>
chip_gen: v5e
topology: v5e:2x2
jax: 0.10.0
libtpu: 0.0.40
codegen_flags: <defaults>
</compile_context>

<pallas_src>
import math
import numpy as np
import jax
import jax.numpy as jnp
from jax.experimental import pallas as pl
from jax.experimental.pallas import tpu as pltpu

# ----------------------------- configuration -------------------------------
IN_CH = 2
OUT_CH = 4
KH = KW = 3
STRIDE = 1
PADDING = 1
DILATION = 1

K = 2                      # config['data_in_k']  (kernel specializes the K == 2 structure)
KK = 2 ** K                # 2**k truth-table entries per LUT
LEVELS = 2                 # config['data_in_levels']
H = W = 8                  # config['data_in_dim']
BATCH = 2
# config['data_in_binarization_level'] != 1 -> float LUT weights (no weight sign STE)

OH = math.floor((H + 2 * PADDING - DILATION * (KH - 1) - 1) / STRIDE + 1)
OW = math.floor((W + 2 * PADDING - DILATION * (KW - 1) - 1) / STRIDE + 1)
L = OH * OW
N = BATCH * L                         # flattened positions (lane axis)
D = IN_CH * KH * KW                   # unfold columns per position (18)
T = OUT_CH * D                        # tables_count (one k-LUT per conv weight)

DP = ((D + 7) // 8) * 8               # 24: sublane-aligned column count (zero-padded)
LDP = LEVELS * DP                     # 48: rows of the stacked per-level sign matrix
LTP = LEVELS * OUT_CH * DP            # 192: padded (level, table) monomial rows

TN = 128                              # positions per grid step (N == 128 -> grid=(1,))
N_PAD = ((N + TN - 1) // TN) * TN

HIGH = jax.lax.Precision.HIGHEST


# ----------------------------- Pallas kernel --------------------------------
def lutconv_kernel(m_ref, x_ref, sel_ref, alin_ref, bm2_ref, c0_ref, out_ref):
    # m_ref   : SMEM (LEVELS,) f32   |means| (residual quantizer step sizes)
    # x_ref   : (DP, TN)   f32       raw unfold, positions on lanes, rows >= D zero-padded
    # sel_ref : (LTP, LDP) bf16      one-hot gather of each table's j=1 LUT input per level
    # alin_ref: (OUT_CH, LDP) f32    folded degree-1 monomials (|means| scales included)
    # bm2_ref : (OUT_CH, LTP) f32    degree-2 coefficients * |means|^2, grouped per out ch
    # c0_ref  : (OUT_CH, 1) f32      constant monomial, summed over tables and levels
    # out_ref : (OUT_CH, TN) f32
    x = x_ref[...]

    # Residual sign quantization (ReBNet) fused on the VPU: only exact +/-1 signs
    # are materialized; level scales live in alin/bm2 on the weight side.
    signs = []
    resid = x
    for l in range(LEVELS):
        s_l = jnp.where(resid >= 0, 1.0, -1.0)
        signs.append(s_l)
        if l < LEVELS - 1:
            resid = resid - s_l * m_ref[l]
    s = jnp.concatenate(signs, axis=0)                       # (LDP, TN), aligned blocks

    # Both degree-1 monomials folded into one small f32 dot.
    lin = jnp.dot(alin_ref[...], s, preferred_element_type=jnp.float32)   # (OUT_CH, TN)

    # j=1 LUT input of every (level, table): one-hot gather on the MXU.
    # Signs are exactly +/-1 and sel is 0/1, so bf16 operands are exact.
    xg1 = jnp.dot(sel_ref[...], s.astype(jnp.bfloat16),
                  preferred_element_type=jnp.float32)        # (LTP, TN)

    # j=0 LUT input is the conv position itself: aligned replication (one DP-row
    # block per (level, out_channel)), no MXU work.
    xg0 = jnp.concatenate(
        [signs[l] for l in range(LEVELS) for _ in range(OUT_CH)], axis=0)  # (LTP, TN)

    mono = xg0 * xg1                                         # degree-2 monomials (VPU, f32)
    deg2 = jnp.dot(bm2_ref[...], mono, preferred_element_type=jnp.float32)  # (OUT_CH, TN)

    # Note: lin/deg2 dots are kept separate instead of concatenating [s; mono];
    # at these shapes the concat copy traffic costs as much as the saved MXU fill.
    out_ref[...] = lin + deg2 + c0_ref[...]


def lutconv_pallas(m_abs, x_unf, sel_bf, alin, bm2, c0):
    # x_unf: (DP, N_PAD) f32, positions on lanes.
    return pl.pallas_call(
        lutconv_kernel,
        out_shape=jax.ShapeDtypeStruct((OUT_CH, N_PAD), jnp.float32),
        grid=(N_PAD // TN,),
        in_specs=[
            pl.BlockSpec(memory_space=pltpu.MemorySpace.SMEM),      # |means|
            pl.BlockSpec((DP, TN), lambda n: (0, n)),               # unfold tile
            pl.BlockSpec((LTP, LDP), lambda n: (0, 0)),             # resident constants
            pl.BlockSpec((OUT_CH, LDP), lambda n: (0, 0)),
            pl.BlockSpec((OUT_CH, LTP), lambda n: (0, 0)),
            pl.BlockSpec((OUT_CH, 1), lambda n: (0, 0)),
        ],
        out_specs=pl.BlockSpec((OUT_CH, TN), lambda n: (0, n)),
        # For larger N: raise TN toward 512 (working set < 2 MiB fits every
        # generation's scoped VMEM) and keep >=2 parallel steps for v7x's 2 TCs.
        compiler_params=pltpu.CompilerParams(dimension_semantics=("parallel",)),
    )(m_abs, x_unf, sel_bf, alin, bm2, c0)


# --------------------- static structure (compile-time) ----------------------
def truth_table_signs():
    # s[i, j] = +1 if bit j of truth-table entry i else -1 (LagrangeTrainer vertex order)
    return np.asarray([[1.0 if ((i >> j) & 1) else -1.0 for j in range(K)]
                       for i in range(KK)], np.float32)


def hadamard_matrix():
    """hmat[m, i] = 2^-K * prod_{j in m} s[i, j]:
       sum_i w_i * prod_j (1 + s_ij x_j)/2  ==  sum_m (hmat @ w)[m] * prod_{j in m} x_j."""
    s = truth_table_signs()
    h = np.ones((KK, KK), np.float32)
    for m in range(KK):
        for i in range(KK):
            v = 1.0
            for j in range(K):
                if (m >> j) & 1:
                    v *= s[i, j]
            h[m, i] = v
    return h / (2.0 ** K)


def build_input_mask(seed: int = 0) -> np.ndarray:
    """MaskExpanded: per (out_c, in_c, kh, kw) table, k input selections
    (the conv position + k-1 pseudo-random picks from the same channel window).
    Shape (T*K, 3) of (in_channel, kh_index, kw_index)."""
    rng = np.random.RandomState(seed)
    rows = []
    for _oc in range(OUT_CH):
        for ic in range(IN_CH):
            window = [(ic, a, b) for a in range(KH) for b in range(KW)]
            for a in range(KH):
                for b in range(KW):
                    conv_index = (ic, a, b)
                    subs = [s for s in window if s != conv_index]
                    rows.append(conv_index)
                    picks = rng.choice(len(subs), size=K - 1, replace=False)
                    for p in picks:
                        rows.append(subs[int(p)])
    return np.asarray(rows, dtype=np.int32)


def build_static(input_mask_np):
    """Compile-time constants: one-hot gather (j=1 only), position/pick one-hots,
    table->channel grouping, Hadamard matrix."""
    cols = (input_mask_np[:, 0] * (KH * KW) + input_mask_np[:, 1] * KW
            + input_mask_np[:, 2]).reshape(T, K)
    cols0, cols1 = cols[:, 0], cols[:, 1]
    # MaskExpanded guarantees the first LUT input is the conv position itself.
    assert np.array_equal(cols0, np.arange(T) % D)

    sel = np.zeros((LTP, LDP), np.float32)                   # one-hot, j=1 picks only
    for l in range(LEVELS):
        for oc in range(OUT_CH):
            for d in range(D):
                t = oc * D + d
                sel[(l * OUT_CH + oc) * DP + d, l * DP + cols1[t]] = 1.0

    p0 = np.eye(D, dtype=np.float32)[cols0]                  # (T, D)
    p1 = np.eye(D, dtype=np.float32)[cols1]                  # (T, D)
    table_oc = np.arange(T) // D
    grp = np.eye(OUT_CH, dtype=np.float32)[table_oc]         # (T, OUT_CH)
    return dict(
        sel_bf=jnp.asarray(sel, jnp.bfloat16),
        p0=jnp.asarray(p0), p1=jnp.asarray(p1),
        grp=jnp.asarray(grp),
        eye_o=jnp.asarray(np.eye(OUT_CH, dtype=np.float32)),
        hmat=jnp.asarray(hadamard_matrix()),
    )


# --------------------- weight-side constant folding (traced) ----------------
def fold_weight_side(weight, pruning_masks, m_abs, st):
    """alin: (OUT_CH, LDP) degree-1 fold (incl. |means|); bm2: (OUT_CH, LTP)
    degree-2 coefficients * |means|^2; c0: (OUT_CH, 1) constant term."""
    # TODO(synk): binarization_level==1 weight sign-STE path not exercised here.
    w_eff = weight * pruning_masks                               # (LEVELS, KK, T)
    coeffs = jnp.einsum("mi,lit->lmt", st["hmat"], w_eff, precision=HIGH)

    lin = (jnp.einsum("to,lt,tc->loc", st["grp"], coeffs[:, 1, :], st["p0"], precision=HIGH)
           + jnp.einsum("to,lt,tc->loc", st["grp"], coeffs[:, 2, :], st["p1"], precision=HIGH))
    lin = lin * m_abs[:, None, None]                             # (LEVELS, OUT_CH, D)
    alin = jnp.pad(lin, ((0, 0), (0, 0), (0, DP - D)))
    alin = jnp.transpose(alin, (1, 0, 2)).reshape(OUT_CH, LDP)

    c3 = coeffs[:, 3, :].reshape(LEVELS, OUT_CH, D) * (m_abs ** 2)[:, None, None]
    c3 = jnp.pad(c3, ((0, 0), (0, 0), (0, DP - D)))              # (LEVELS, OUT_CH, DP)
    bm2 = jnp.einsum("lod,op->plod", c3, st["eye_o"], precision=HIGH).reshape(OUT_CH, LTP)

    c0 = jnp.einsum("lt,to->o", coeffs[:, 0, :], st["grp"], precision=HIGH).reshape(OUT_CH, 1)
    return alin, bm2, c0


# ------------------------------- JAX glue ------------------------------------
def unfold_nchw(x):
    """torch.nn.Unfold semantics: (B, C, H, W) -> (B, C*KH*KW, OH*OW)."""
    B = x.shape[0]
    xp = jnp.pad(x, ((0, 0), (0, 0), (PADDING, PADDING), (PADDING, PADDING)))
    cols = []
    for a in range(KH):
        for b in range(KW):
            h0, w0 = a * DILATION, b * DILATION
            patch = xp[:, :,
                       h0:h0 + (OH - 1) * STRIDE + 1:STRIDE,
                       w0:w0 + (OW - 1) * STRIDE + 1:STRIDE]     # (B, C, OH, OW)
            cols.append(patch)
    p = jnp.stack(cols, axis=2)                                  # (B, C, KH*KW, OH, OW)
    return p.reshape(B, D, L)


def make_forward(st):
    # TODO(synk): the unfold could itself be moved in-kernel (9 shifted strided reads
    # of a padded (C,H+2,W+2) image); kept in the jitted wrapper so it fuses anyway.
    @jax.jit
    def forward(x, weight, pruning_masks, means):
        b = x.shape[0]
        folded = unfold_nchw(x)                                   # (B, D, L)
        x_unf = jnp.transpose(folded, (1, 0, 2)).reshape(D, b * L)  # (D, N)
        x_unf = jnp.pad(x_unf, ((0, DP - D), (0, N_PAD - N)))     # (DP, N_PAD)
        m_abs = jnp.abs(means)
        alin, bm2, c0 = fold_weight_side(weight, pruning_masks, m_abs, st)
        out = lutconv_pallas(m_abs, x_unf, st["sel_bf"], alin, bm2, c0)
        # Padded lanes evaluate to c0 (nonzero) and must stay sliced off here.
        out = out[:, :N].reshape(OUT_CH, b, OH, OW)
        return jnp.transpose(out, (1, 0, 2, 3))                   # (B, OUT_CH, OH, OW)
    return forward


# ------------------------------- reference -----------------------------------
def residual_sign_quantize(x, means):
    """ReBNet residual binarization; binary_quantizer(bipolar, non-stochastic)
    taken as x >= 0 -> +1 else -1.  Returns (LEVELS, *x.shape)."""
    resid = x
    outs = []
    for l in range(LEVELS):
        q = jnp.where(resid >= 0, 1.0, -1.0) * jnp.abs(means[l])
        outs.append(q)
        resid = resid - q
    return jnp.stack(outs, axis=0)


def reference_forward(x, weight, pruning_masks, means, input_mask, grp):
    """Pure-JAX reference in the original gate/truth-table formulation."""
    B = x.shape[0]
    folded = jnp.transpose(unfold_nchw(x), (0, 2, 1))            # (B, L, D)
    q = residual_sign_quantize(folded, means).reshape(LEVELS, B, L, IN_CH, KH, KW)
    m = input_mask
    expanded = q[:, :, :, m[:, 0], m[:, 1], m[:, 2]].reshape(LEVELS, B * L, T, K)
    xq = jnp.transpose(expanded, (0, 3, 1, 2))                   # (LEVELS, K, N, T)
    s = jnp.asarray(truth_table_signs())                         # (KK, K)
    gate = jnp.prod((1.0 + s[None, :, :, None, None] * xq[:, None]) * 0.5, axis=2)
    w_eff = weight * pruning_masks                               # (LEVELS, KK, T)
    lut = jnp.einsum("lint,lit->nt", gate, w_eff, precision=HIGH)    # (N, T)
    out = jnp.dot(lut, grp, precision=HIGH)                      # (N, OUT_CH)
    out = out.reshape(B, L, OUT_CH)
    return jnp.transpose(out, (0, 2, 1)).reshape(B, OUT_CH, OH, OW)


# ------------------------------- main ----------------------------------------
if __name__ == "__main__":
    key = jax.random.PRNGKey(0)
    kx, kw = jax.random.split(key)

    x = jax.random.normal(kx, (BATCH, IN_CH, H, W), dtype=jnp.float32)

    # Deterministic synthetic parameters (shapes follow the module's __init__):
    #   trainer.weight        : (LEVELS, 2**k, tables_count)
    #   trainer.pruning_masks : ones_like(weight)
    #   means                 : arange+1 reversed, normalized -> [2/3, 1/3]
    weight = jax.random.normal(kw, (LEVELS, KK, T), dtype=jnp.float32)
    pruning_masks = jnp.ones_like(weight)
    ars = (np.arange(LEVELS) + 1.0)[::-1]
    means = jnp.asarray(ars / ars.sum(), jnp.float32)

    input_mask_np = build_input_mask(seed=0)                     # (T*K, 3) numpy
    st = build_static(input_mask_np)
    forward = make_forward(st)

    # TODO(synk): trainer `initalize=True` / `targets` LUT-initialization path is
    # training-time machinery with no inference semantics; not implemented.
    # TODO(synk): kernel specializes the K==2 monomial structure; general K would
    # re-introduce a loop over >=2-degree monomials.
    out = jax.block_until_ready(forward(x, weight, pruning_masks, means))

    table_oc = np.arange(T) // D
    grp = jnp.asarray(np.eye(OUT_CH, dtype=np.float32)[table_oc])    # (T, OUT_CH)
    ref = jax.block_until_ready(
        reference_forward(x, weight, pruning_masks, means,
                          jnp.asarray(input_mask_np), grp))

    assert out.shape == (BATCH, OUT_CH, OH, OW), out.shape
    assert np.allclose(np.asarray(out), np.asarray(ref), rtol=1e-3, atol=1e-3)
    print("KERNEL_OK")
</pallas_src>

<mosaic_0001>
module attributes {stable_mosaic.version = 11 : i64} {
  func.func @lutconv_kernel(%arg0: i32, %arg1: memref<2xf32, #tpu.memory_space<smem>>, %arg2: memref<24x128xf32, #tpu.memory_space<vmem>>, %arg3: memref<192x48xbf16, #tpu.memory_space<vmem>>, %arg4: memref<4x48xf32, #tpu.memory_space<vmem>>, %arg5: memref<4x192xf32, #tpu.memory_space<vmem>>, %arg6: memref<4x1xf32, #tpu.memory_space<vmem>>, %arg7: memref<4x128xf32, #tpu.memory_space<vmem>>) attributes {dimension_semantics = [#tpu.dimension_semantics<parallel>], iteration_bounds = array<i64: 1>, scalar_prefetch = 0 : i64, scratch_operands = 0 : i64, tpu.core_type = #tpu.core_type<tc>, window_params = [{transform_indices = @transform_0, window_bounds = array<i64: 2>}, {transform_indices = @transform_1, window_bounds = array<i64: 24, 128>}, {pipeline_mode = #tpu.pipeline_mode<synchronous>, transform_indices = @transform_2, window_bounds = array<i64: 192, 48>}, {pipeline_mode = #tpu.pipeline_mode<synchronous>, transform_indices = @transform_3, window_bounds = array<i64: 4, 48>}, {pipeline_mode = #tpu.pipeline_mode<synchronous>, transform_indices = @transform_4, window_bounds = array<i64: 4, 192>}, {pipeline_mode = #tpu.pipeline_mode<synchronous>, transform_indices = @transform_5, window_bounds = array<i64: 4, 1>}, {transform_indices = @transform_6, window_bounds = array<i64: 4, 128>}]} {
    %c0 = arith.constant 0 : index
    %c0_0 = arith.constant 0 : index
    %0 = vector.load %arg2[%c0, %c0_0] : memref<24x128xf32, #tpu.memory_space<vmem>>, vector<24x128xf32>
    %cst = arith.constant 0.000000e+00 : f32
    %1 = vector.broadcast %cst : f32 to vector<24x128xf32>
    %2 = arith.cmpf oge, %0, %1 : vector<24x128xf32>
    %cst_1 = arith.constant 1.000000e+00 : f32
    %cst_2 = arith.constant -1.000000e+00 : f32
    %3 = vector.broadcast %cst_1 : f32 to vector<24x128xf32>
    %4 = vector.broadcast %cst_2 : f32 to vector<24x128xf32>
    %5 = arith.select %2, %3, %4 : vector<24x128xi1>, vector<24x128xf32>
    %c0_3 = arith.constant 0 : index
    %6 = memref.load %arg1[%c0_3] : memref<2xf32, #tpu.memory_space<smem>>
    %7 = vector.broadcast %6 : f32 to vector<24x128xf32>
    %8 = arith.mulf %5, %7 : vector<24x128xf32>
    %9 = arith.subf %0, %8 : vector<24x128xf32>
    %cst_4 = arith.constant 0.000000e+00 : f32
    %10 = vector.broadcast %cst_4 : f32 to vector<24x128xf32>
    %11 = arith.cmpf oge, %9, %10 : vector<24x128xf32>
    %cst_5 = arith.constant 1.000000e+00 : f32
    %cst_6 = arith.constant -1.000000e+00 : f32
    %12 = vector.broadcast %cst_5 : f32 to vector<24x128xf32>
    %13 = vector.broadcast %cst_6 : f32 to vector<24x128xf32>
    %14 = arith.select %11, %12, %13 : vector<24x128xi1>, vector<24x128xf32>
    %15 = tpu.concatenate %5, %14 in 0 : vector<24x128xf32>, vector<24x128xf32> -> vector<48x128xf32>
    %c0_7 = arith.constant 0 : index
    %c0_8 = arith.constant 0 : index
    %16 = vector.load %arg4[%c0_7, %c0_8] : memref<4x48xf32, #tpu.memory_space<vmem>>, vector<4x48xf32>
    %cst_9 = arith.constant dense<0.000000e+00> : vector<4x128xf32>
    %17 = tpu.matmul %16, %15, %cst_9 {dimension_numbers = #tpu.dot_dimension_numbers<[1], [0], [0], [1], [0, 0, 1, 1], [], []>} : vector<4x48xf32>, vector<48x128xf32>, vector<4x128xf32> -> vector<4x128xf32>
    %c0_10 = arith.constant 0 : index
    %c0_11 = arith.constant 0 : index
    %18 = vector.load %arg3[%c0_10, %c0_11] : memref<192x48xbf16, #tpu.memory_space<vmem>>, vector<192x48xbf16>
    %19 = arith.truncf %15 : vector<48x128xf32> to vector<48x128xbf16>
    %cst_12 = arith.constant dense<0.000000e+00> : vector<192x128xf32>
    %20 = tpu.matmul %18, %19, %cst_12 {dimension_numbers = #tpu.dot_dimension_numbers<[1], [0], [0], [1], [0, 0, 1, 1], [], []>} : vector<192x48xbf16>, vector<48x128xbf16>, vector<192x128xf32> -> vector<192x128xf32>
    %21 = tpu.concatenate %5, %5, %5, %5, %14, %14, %14, %14 in 0 : vector<24x128xf32>, vector<24x128xf32>, vector<24x128xf32>, vector<24x128xf32>, vector<24x128xf32>, vector<24x128xf32>, vector<24x128xf32>, vector<24x128xf32> -> vector<192x128xf32>
    %22 = arith.mulf %21, %20 : vector<192x128xf32>
    %c0_13 = arith.constant 0 : index
    %c0_14 = arith.constant 0 : index
    %23 = vector.load %arg5[%c0_13, %c0_14] : memref<4x192xf32, #tpu.memory_space<vmem>>, vector<4x192xf32>
    %cst_15 = arith.constant dense<0.000000e+00> : vector<4x128xf32>
    %24 = tpu.matmul %23, %22, %cst_15 {dimension_numbers = #tpu.dot_dimension_numbers<[1], [0], [0], [1], [0, 0, 1, 1], [], []>} : vector<4x192xf32>, vector<192x128xf32>, vector<4x128xf32> -> vector<4x128xf32>
    %25 = arith.addf %17, %24 : vector<4x128xf32>
    %c0_16 = arith.constant 0 : index
    %c0_17 = arith.constant 0 : index
    %26 = vector.load %arg6[%c0_16, %c0_17] : memref<4x1xf32, #tpu.memory_space<vmem>>, vector<4x1xf32>
    %27 = vector.broadcast %26 : vector<4x1xf32> to vector<4x128xf32>
    %28 = arith.addf %25, %27 : vector<4x128xf32>
    %c0_18 = arith.constant 0 : index
    %c0_19 = arith.constant 0 : index
    %29 = vector.load %arg7[%c0_18, %c0_19] : memref<4x128xf32, #tpu.memory_space<vmem>>, vector<4x128xf32>
    tpu.vector_store %arg7[%c0_18, %c0_19], %28 {strides = array<i32>} : memref<4x128xf32, #tpu.memory_space<vmem>>, vector<4x128xf32>,
    return
  }
  func.func @transform_0(%arg0: i32) -> i32 {
    %c0_i32 = arith.constant 0 : i32
    %c0_i32_0 = arith.constant 0 : i32
    return %c0_i32 : i32
  }
  func.func @transform_1(%arg0: i32) -> (i32, i32) {
    %c0_i32 = arith.constant 0 : i32
    %c0_i32_0 = arith.constant 0 : i32
    return %c0_i32, %arg0 : i32, i32
  }
  func.func @transform_2(%arg0: i32) -> (i32, i32) {
    %c0_i32 = arith.constant 0 : i32
    %c0_i32_0 = arith.constant 0 : i32
    %c0_i32_1 = arith.constant 0 : i32
    return %c0_i32, %c0_i32_0 : i32, i32
  }
  func.func @transform_3(%arg0: i32) -> (i32, i32) {
    %c0_i32 = arith.constant 0 : i32
    %c0_i32_0 = arith.constant 0 : i32
    %c0_i32_1 = arith.constant 0 : i32
    return %c0_i32, %c0_i32_0 : i32, i32
  }
  func.func @transform_4(%arg0: i32) -> (i32, i32) {
    %c0_i32 = arith.constant 0 : i32
    %c0_i32_0 = arith.constant 0 : i32
    %c0_i32_1 = arith.constant 0 : i32
    return %c0_i32, %c0_i32_0 : i32, i32
  }
  func.func @transform_5(%arg0: i32) -> (i32, i32) {
    %c0_i32 = arith.constant 0 : i32
    %c0_i32_0 = arith.constant 0 : i32
    %c0_i32_1 = arith.constant 0 : i32
    return %c0_i32, %c0_i32_0 : i32, i32
  }
  func.func @transform_6(%arg0: i32) -> (i32, i32) {
    %c0_i32 = arith.constant 0 : i32
    %c0_i32_0 = arith.constant 0 : i32
    return %c0_i32, %arg0 : i32, i32
  }
}

</mosaic_0001>

<bundles_post_ra>
// kernel: squeeze.6
= control target key start
LH: loop header
LB: loop body
LE: loop exit
PB: predicated region body
PF: predicated region fallthrough
CT: control target
= control target key end

     0   :  { %s44_s8 = smov 74   ;;  %s45_s9 = smov 92   ;;  %vm7_vm0 = vcmask 146432   ;;  %s65_s0 = inlined_call_operand.vmem [shape: f32[2,72], index: 0, kind: input, shape index: {}]   ;;  %s66_s1 = inlined_call_operand.vmem [shape: f32[2,4,18], index: 1, kind: output, shape index: {}]  }
   0x1   :  { %v4_v0 = vld [vmem:[%s65_s0] sm:$0x3]  ;;  %s43_s0 = smov 110  }
   0x2   :  { %5 = vst [vmem:[#allocation1] sm:$0x3] %v4_v0 }
   0x9   :  { %v9_v1 = vld [vmem:[#allocation1] sm:$0x3]  }
   0xa   :  { %v21_v2 = vld [vmem:[#allocation1] sm:$0x3]   ;;  %10 = vrot.lane.b32.xlu0 %v9_v1, %s43_s0 }
   0xb   :  { %22 = vrot.lane.b32.xlu1 %v21_v2, %s44_s8  ;;  %v15_v3 = vld [vmem:[#allocation1] sm:$0x3]  }
   0xc   :  { %v6_v4 = vld [vmem:[#allocation1] sm:$0x3]  }
   0xd   :  { %8 = vst.msk [vmem:[#allocation0] ss:$8 sm:$0x3] %vm7_vm0, %v6_v4  }
  0x12   :  { %16 = vrot.lane.b32.xlu0 %v15_v3, %s45_s9 }
  0x7c   :  { %v11_v5 = vpop.permute.xlu0 %10  }
  0x7d   :  { %v23_v6 = vpop.permute.xlu1 %22   ;;  %14 = vst.msk [vmem:[#allocation0 + $0x1] ss:$8 sm:$0x3] %vm7_vm0, %v11_v5  }
  0x7e   :  { %26 = vst.msk [vmem:[#allocation0 + $0x3] ss:$8 sm:$0x3] %vm7_vm0, %v23_v6  }
  0x84   :  { %v17_v7 = vpop.permute.xlu0 %16  }
  0x85   :  { %20 = vst.msk [vmem:[#allocation0 + $0x2] ss:$8 sm:$0x3] %vm7_vm0, %v17_v7  }
  0x8c   :  { %v29_v8 = vld [vmem:[#allocation0] sm:$0xf]  ;;  %v34_v9 = vld [vmem:[#allocation0 + $0x8] sm:$0xf] }
  0x8d   :  { %32 = vst [vmem:[%s66_s1] sm:$0xf] %v29_v8 }
  0x8e   :  { %39 = vst [vmem:[%s66_s1 + $0x4] sm:$0xf] %v34_v9 }

// kernel: forward.1
= control target key start
LH: loop header
LB: loop body
LE: loop exit
PB: predicated region body
PF: predicated region fallthrough
CT: control target
= control target key end

     0   :  { %11 = vsyncpa [#allocation3], 0  ;;  %s464_s24 = smov [#allocation2]   ;;  %s635_s0 = inlined_call_operand.vmem [shape: f32[2], index: 0, kind: input, shape index: {}]   ;;  %s636_s1 = inlined_call_operand.vmem [shape: f32[24,128], index: 1, kind: input, shape index: {}]   ;;  %s637_s2 = inlined_call_operand.vmem [shape: bf16[192,48], index: 2, kind: input, shape index: {}]   ;;  %s638_s3 = inlined_call_operand.vmem [shape: f32[4,48], index: 3, kind: input, shape index: {}]   ;;  %s639_s4 = inlined_call_operand.vmem [shape: f32[4,192], index: 4, kind: input, shape index: {}]   ;;  %s640_s5 = inlined_call_operand.vmem [shape: f32[4,1], index: 5, kind: input, shape index: {}]   ;;  %s641_s6 = inlined_call_operand.vmem [shape: f32[4,128], index: 6, kind: output, shape index: {}]  }
   0x1   :  { %s17_s23 = sshll.u32 %s635_s0, 4  ;;  %s18_s23 = int_to_ptr.vmem [resolvable:$true] %s17_s23 }
   0x2   :  { %20 = dma.vmem_to_smem %s18_s23, 16, %s464_s24, [#allocation3]  }
   0x3   :  { %462 = dma.done.wait [#allocation3], 16  }
   0x4   :  { %463 = vsyncadd [#allocation3], 4294967280 }
   0x5   :  { %35 = sfence }
   0x6   :  { %v38_v0 = vld [vmem:[%s636_s1 + $0x8] sm:$0xff]  ;;  %v39_v1 = vld [vmem:[%s636_s1 + $0x10] sm:$0xff]  ;;  %s46_s29 = sld [smem:[#allocation2]]  ;;  %v37_v2 = vld [vmem:[%s636_s1] sm:$0xff]  ;;  %v465_v3 = vmov -1.0   ;;  %vm148_vm6 = vcmask 392192  }
   0x7   :  { %vm41_vm0 = vcmp.ge.f32.partialorder %v38_v0, 0.0  ;;  %vm42_vm1 = vcmp.ge.f32.partialorder %v39_v1, 0.0  ;;  %vm40_vm2 = vcmp.ge.f32.partialorder %v37_v2, 0.0  ;;  %v425_v20 = vld [vmem:[%s637_s2] sm:$0xff]  ;;  %v434_v22 = vld [vmem:[%s637_s2 + $0x48] sm:$0xff]  ;;  %v432_v23 = vld [vmem:[%s637_s2 + $0x38] sm:$0xff] }
   0x8   :  { %v514_v4 = vsel %vm41_vm0, 1.0, %v465_v3  ;;  %v516_v5 = vsel %vm42_vm1, 1.0, %v465_v3  ;;  %v518_v6 = vsel %vm40_vm2, 1.0, %v465_v3  ;;  %v429_v21 = vld [vmem:[%s637_s2 + $0x20] sm:$0xff]  ;;  %v426_v24 = vld [vmem:[%s637_s2 + $0x8] sm:$0xff]  ;;  %v435_v26 = vld [vmem:[%s637_s2 + $0x50] sm:$0xff] }
   0x9   :  { %v85_v19 = vpack.c.bf16 %v514_v4, %v518_v6  ;;  %v430_v25 = vld [vmem:[%s637_s2 + $0x28] sm:$0xff]  ;;  %v433_v27 = vld [vmem:[%s637_s2 + $0x40] sm:$0xff]  ;;  %v427_v28 = vld [vmem:[%s637_s2 + $0x10] sm:$0xff]  ;;  %v466_v58 = vmov 0   ;;  %vm284_vm7 = vcmask 523264  }
   0xa   :  { %v431_v29 = vld [vmem:[%s637_s2 + $0x30] sm:$0xff]  ;;  %v436_v30 = vld [vmem:[%s637_s2 + $0x58] sm:$0xff]  ;;  %v278_v47 = vld [vmem:[%s639_s4] sm:$0xff]  ;;  %449 = vset.pattern.permute.xlu0 %v466_v58 }
   0xb   :  { %v428_v31 = vld [vmem:[%s637_s2 + $0x18] sm:$0xff]  ;;  %280 = vst [vmem:[#allocation1] ss:$2 sm:$0xff] %v278_v47  ;;  %v60_v51 = vld [vmem:[%s638_s3] sm:$0xf] }
   0xc   :  { %v47_v7 = vstv %s46_s29  ;;  %v350_v56 = vld [vmem:[%s640_s5] sm:$0xf] }
   0xd   :  { %v49_v8 = vmul.f32 %v47_v7, %v514_v4  ;;  %v50_v9 = vmul.f32 %v47_v7, %v516_v5  ;;  %v48_v10 = vmul.f32 %v47_v7, %v518_v6  ;;  %353 = vperm.xlu0 %449, %v350_v56  }
   0xf   :  { %v52_v11 = vsub.f32 %v38_v0, %v49_v8  ;;  %v53_v12 = vsub.f32 %v39_v1, %v50_v9  ;;  %v51_v13 = vsub.f32 %v37_v2, %v48_v10 }
  0x11   :  { %vm55_vm3 = vcmp.ge.f32.partialorder %v52_v11, 0.0  ;;  %vm56_vm4 = vcmp.ge.f32.partialorder %v53_v12, 0.0  ;;  %vm54_vm5 = vcmp.ge.f32.partialorder %v51_v13, 0.0 }
  0x12   :  { %v523_v14 = vsel %vm55_vm3, 1.0, %v465_v3  ;;  %v525_v15 = vsel %vm56_vm4, 1.0, %v465_v3  ;;  %v527_v16 = vsel %vm54_vm5, 1.0, %v465_v3 }
  0x13   :  { %v87_v17 = vpack.c.bf16 %v525_v15, %v523_v14  ;;  %v86_v18 = vpack.c.bf16 %v527_v16, %v516_v5 }
  0x15   :  { %190 = vmatpush.bf16.msra.mxu0 %v87_v17  ;;  %437 = vmatpush.bf16.msra.mxu1 %v87_v17 }
  0x16   :  { %439 = vmatpush.bf16.msra.mxu3 %v87_v17  ;;  %438 = vmatpush.bf16.msra.mxu2 %v87_v17 }
  0x19   :  { %191 = vmatpush.bf16.msra.mxu0 %v86_v18  ;;  %440 = vmatpush.bf16.msra.mxu1 %v86_v18 }
  0x1a   :  { %442 = vmatpush.bf16.msra.mxu3 %v86_v18  ;;  %441 = vmatpush.bf16.msra.mxu2 %v86_v18 }
  0x1d   :  { %192 = vmatpush.bf16.msra.mxu0 %v85_v19  ;;  %443 = vmatpush.bf16.msra.mxu1 %v85_v19 }
  0x1e   :  { %445 = vmatpush.bf16.msra.mxu3 %v85_v19  ;;  %444 = vmatpush.bf16.msra.mxu2 %v85_v19 }
  0x20   :  { %411 = vmatmul.msk.bf16.vlgmr.msra.gmra.mxu0 %vm148_vm6, %v425_v20  ;;  %415 = vmatmul.msk.bf16.vlgmr.msra.gmra.mxu1 %vm148_vm6, %v429_v21  ;;  %v282_v21 = vld.sshfl [vmem:[#allocation1 + $0x8] sm:$0xff pattern:$0x75316420] }
  0x21   :  { %420 = vmatmul.msk.bf16.vlgmr.msra.gmra.mxu3 %vm148_vm6, %v434_v22  ;;  %418 = vmatmul.msk.bf16.vlgmr.msra.gmra.mxu2 %vm148_vm6, %v432_v23 }
  0x22   :  { %340 = vmatpush.msrb.mxu3 %v525_v15 }
  0x24   :  { %341 = vmatpush.msrb.mxu3 %v523_v14 }
  0x26   :  { %342 = vmatpush.msrb.mxu3 %v527_v16 }
  0x28   :  { %343 = vmatpush.msrb.mxu3 %v516_v5 }
  0x2a   :  { %344 = vmatpush.msrb.mxu3 %v514_v4 }
  0x2c   :  { %345 = vmatpush.msrb.mxu3 %v518_v6 }
  0x30   :  { %412 = vmatmul.msk.bf16.gmra.mxu0 %vm148_vm6, %v426_v24  ;;  %416 = vmatmul.msk.bf16.gmra.mxu1 %vm148_vm6, %v430_v25  ;;  %v281_v24 = vld.sshfl [vmem:[#allocation1] sm:$0xff pattern:$0x75316420] }
  0x31   :  { %421 = vmatmul.msk.bf16.gmra.mxu3 %vm148_vm6, %v435_v26  ;;  %419 = vmatmul.msk.bf16.gmra.mxu2 %vm148_vm6, %v433_v27 }
  0x40   :  { %413 = vmatmul.msk.bf16.gmra.mxu0 %vm148_vm6, %v427_v28  ;;  %417 = vmatmul.msk.bf16.gmra.mxu1 %vm148_vm6, %v431_v29 }
  0x41   :  { %422 = vmatmul.msk.bf16.gmra.mxu3 %vm148_vm6, %v436_v30 }
  0x50   :  { %414 = vmatmul.msk.bf16.gmra.mxu0 %vm148_vm6, %v428_v31 }
  0x51   :  { %424 = vmatmul.msk.f32.vlgmr.msrb.gmra.mxu3 %vm148_vm6, %v60_v51 }
  0x7f   :  { %v354_v29 = vpop.permute.xlu0 %353 }
  0x9d   :  { %v589_v32 = vpop.f32.mrf.mxu0  ;;  %v214_v33 = vpop.f32.mrf.mxu1 }
  0x9e   :  { %v262_v3 = vmul.f32 %v214_v33, %v516_v5 }
  0xa4   :  { %v239_v34 = vpop.f32.mrf.mxu3  ;;  %v229_v35 = vpop.f32.mrf.mxu2 }
  0xa5   :  { %v591_v36 = vpop.f32.mrf.mxu0  ;;  %v216_v37 = vpop.f32.mrf.mxu1  ;;  %v268_v42 = vmul.f32 %v229_v35, %v525_v15  ;;  %v272_v13 = vmul.f32 %v239_v34, %v527_v16 }
  0xa6   :  { %v263_v1 = vmul.f32 %v216_v37, %v518_v6 }
  0xac   :  { %v241_v38 = vpop.f32.mrf.mxu3  ;;  %v231_v39 = vpop.f32.mrf.mxu2 }
  0xad   :  { %v593_v40 = vpop.f32.mrf.mxu0  ;;  %v219_v41 = vpop.f32.mrf.mxu1  ;;  %v269_v43 = vmul.f32 %v231_v39, %v527_v16  ;;  %v273_v9 = vmul.f32 %v241_v38, %v523_v14 }
  0xae   :  { %v264_v60 = vmul.f32 %v219_v41, %v514_v4  ;;  %v256_v23 = vmul.f32 %v593_v40, %v516_v5 }
  0xaf   :  { %287 = vmatpush.msrb.mxu1 %v269_v43 }
  0xb1   :  { %288 = vmatpush.msrb.mxu1 %v268_v42 }
  0xb4   :  { %v244_v44 = vpop.f32.mrf.mxu3  ;;  %v234_v62 = vpop.f32.mrf.mxu2 }
  0xb5   :  { %v201_v45 = vpop.f32.mrf.mxu0  ;;  %v221_v46 = vpop.f32.mrf.mxu1  ;;  %v274_v8 = vmul.f32 %v244_v44, %v525_v15  ;;  %v270_v20 = vmul.f32 %v234_v62, %v523_v14 }
  0xb6   :  { %v265_v59 = vmul.f32 %v221_v46, %v516_v5 }
  0xbc   :  { %v246_v48 = vpop.f32.mrf.mxu3  ;;  %v236_v12 = vpop.f32.mrf.mxu2 }
  0xbd   :  { %v204_v49 = vpop.f32.mrf.mxu0  ;;  %v224_v50 = vpop.f32.mrf.mxu1  ;;  %v275_v7 = vmul.f32 %v246_v48, %v527_v16  ;;  %v271_v18 = vmul.f32 %v236_v12, %v525_v15 }
  0xbe   :  { %v266_v57 = vmul.f32 %v224_v50, %v527_v16  ;;  %v258_v22 = vmul.f32 %v204_v49, %v514_v4  ;;  %v257_v16 = vmul.f32 %v201_v45, %v518_v6 }
  0xc4   :  { %v249_v52 = vpop.f32.mrf.mxu3 }
  0xc5   :  { %v206_v53 = vpop.f32.mrf.mxu0  ;;  %v226_v54 = vpop.f32.mrf.mxu1  ;;  %v276_v2 = vmul.f32 %v249_v52, %v523_v14 }
  0xc6   :  { %v267_v55 = vmul.f32 %v226_v54, %v523_v14  ;;  %v259_v19 = vmul.f32 %v206_v53, %v516_v5  ;;  %v254_v14 = vmul.f32 %v589_v32, %v518_v6 }
  0xc8   :  { %289 = vmatpush.msrb.mxu1 %v267_v55 }
  0xca   :  { %290 = vmatpush.msrb.mxu1 %v266_v57 }
  0xcc   :  { %v251_v61 = vpop.f32.mrf.mxu3  ;;  %291 = vmatpush.msrb.mxu1 %v265_v59 }
  0xcd   :  { %v277_v63 = vmul.f32 %v251_v61, %v525_v15  ;;  %v209_v0 = vpop.f32.mrf.mxu0  ;;  %v255_v15 = vmul.f32 %v591_v36, %v514_v4 }
  0xce   :  { %292 = vmatpush.msrb.mxu1 %v264_v60  ;;  %v260_v17 = vmul.f32 %v209_v0, %v518_v6 }
  0xcf   :  { %315 = vmatpush.msrb.mxu2 %v277_v63 }
  0xd0   :  { %293 = vmatpush.msrb.mxu1 %v263_v1 }
  0xd1   :  { %316 = vmatpush.msrb.mxu2 %v276_v2 }
  0xd2   :  { %294 = vmatpush.msrb.mxu1 %v262_v3 }
  0xd3   :  { %317 = vmatpush.msrb.mxu2 %v275_v7 }
  0xd4   :  { %v347_v27 = vpop.f32.mrf.mxu3 }
  0xd5   :  { %318 = vmatpush.msrb.mxu2 %v274_v8  ;;  %v211_v10 = vpop.f32.mrf.mxu0 }
  0xd6   :  { %v261_v11 = vmul.f32 %v211_v10, %v514_v4 }
  0xd7   :  { %319 = vmatpush.msrb.mxu2 %v273_v9 }
  0xd8   :  { %295 = vmatpush.msrb.mxu1 %v261_v11 }
  0xd9   :  { %320 = vmatpush.msrb.mxu2 %v272_v13 }
  0xda   :  { %296 = vmatpush.msrb.mxu1 %v260_v17 }
  0xdb   :  { %321 = vmatpush.msrb.mxu2 %v271_v18 }
  0xdc   :  { %297 = vmatpush.msrb.mxu1 %v259_v19 }
  0xdd   :  { %322 = vmatpush.msrb.mxu2 %v270_v20 }
  0xde   :  { %298 = vmatpush.msrb.mxu1 %v258_v22  ;;  %423 = vmatmul.msk.f32.vlgmr.msrb.gmra.mxu2 %vm284_vm7, %v282_v21 }
  0xe0   :  { %299 = vmatpush.msrb.mxu1 %v257_v16 }
  0xe2   :  { %300 = vmatpush.msrb.mxu1 %v256_v23 }
  0xe4   :  { %301 = vmatpush.msrb.mxu1 %v255_v15 }
  0xe6   :  { %302 = vmatpush.msrb.mxu1 %v254_v14 }
  0xe7   :  { %303 = vmatmul.f32.vlgmr.msrb.gmra.mxu1 %v281_v24 }
 0x161   :  { %v324_v25 = vpop.f32.mrf.mxu2 }
 0x164   :  { %v304_v26 = vpop.f32.mrf.mxu1 }
 0x165   :  { %v325_v28 = vadd.f32 %v324_v25, %v304_v26 }
 0x167   :  { %v348_v30 = vadd.f32 %v347_v27, %v325_v28 }
 0x169   :  { %v356_v31 = vadd.f32 %v354_v29, %v348_v30 }
 0x16b   :  { %357 = vst [vmem:[%s641_s6] sm:$0xf] %v356_v31 }
 0x16c   :  { %362 = vsyncpa [#allocation3], 1 }

</bundles_post_ra>
